<compile_context>
chip_gen: v7x
topology: tpu7x:2x2x1
jax: 0.10.0
libtpu: 0.0.40
codegen_flags: <defaults>
</compile_context>

<pallas_src>
import functools
import numpy as np
import jax
import jax.numpy as jnp
from jax import lax
from jax.experimental import pallas as pl
from jax.experimental.pallas import tpu as pltpu


def _round_up(x, m):
    return ((x + m - 1) // m) * m


# ------------------------------- kernel --------------------------------------

def _ln_relu(y, g, b, eps=1e-5):
    """torch-style LayerNorm (biased variance) + ReLU, all f32 VPU math."""
    mu = jnp.mean(y, axis=-1, keepdims=True)
    xc = y - mu
    var = jnp.mean(xc * xc, axis=-1, keepdims=True)
    return jnp.maximum(xc * lax.rsqrt(var + eps) * g + b, 0.0)


def ppo_kernel(x_ref, w1_ref, vec1_ref, w2_ref, vec2_ref,
               hw1_ref, hvec1_ref, hw2_ref, hb2_ref,
               out_ref,
               *, action_dim, head_width):
    f32 = jnp.float32
    bf16 = jnp.bfloat16

    # ---- shared trunk: Linear(128,256)+LN+ReLU, Linear(256,128)+LN+ReLU -----
    # x_ref is the fused, zero-padded, lane-dense bf16 input slab.
    v1 = vec1_ref[...]
    b1, g1, be1 = v1[0:1], v1[1:2], v1[2:3]
    y = jnp.dot(x_ref[...], w1_ref[...], preferred_element_type=f32) + b1
    h = _ln_relu(y, g1, be1)                                        # (TB, 256) f32

    v2 = vec2_ref[...]
    b2, g2, be2 = v2[0:1], v2[1:2], v2[2:3]
    y = jnp.dot(h.astype(bf16), w2_ref[...], preferred_element_type=f32) + b2
    h = _ln_relu(y, g2, be2)                                        # (TB, 128) f32

    # ---- fused heads: one (128,192) matmul for all three 64-wide hiddens ----
    hv = hvec1_ref[...]
    hb1, hg1, hbe1 = hv[0:1], hv[1:2], hv[2:3]
    y = jnp.dot(h.astype(bf16), hw1_ref[...], preferred_element_type=f32) + hb1  # (TB, 192)

    # segmented LayerNorm via constant lane masks (no slice / no concat)
    seg_w = 3 * head_width
    lane = lax.broadcasted_iota(jnp.int32, (1, seg_w), 1)
    inv_w = 1.0 / float(head_width)
    mu = jnp.zeros_like(y)
    for s in range(3):
        m = ((lane >= s * head_width) & (lane < (s + 1) * head_width)).astype(f32)
        mu = mu + (jnp.sum(y * m, axis=-1, keepdims=True) * inv_w) * m
    xc = y - mu
    var = jnp.zeros_like(y)
    for s in range(3):
        m = ((lane >= s * head_width) & (lane < (s + 1) * head_width)).astype(f32)
        var = var + (jnp.sum(xc * xc * m, axis=-1, keepdims=True) * inv_w) * m
    hh = jnp.maximum(xc * lax.rsqrt(var + 1e-5) * hg1 + hbe1, 0.0)  # (TB, 192) f32

    # block second head layer. Columns of hw2 are packed so the matmul directly
    # yields [logits | logits | value | pos | 0-pad] in output lane positions.
    head = jnp.dot(hh.astype(bf16), hw2_ref[...], preferred_element_type=f32) \
        + hb2_ref[...]                                              # (TB, out_pad)

    A = action_dim
    out_lane = lax.broadcasted_iota(jnp.int32, (1, head.shape[-1]), 1)
    logit_mask = out_lane < A

    # masked softmax over the logit lanes only (no sub-lane slices)
    m_row = jnp.max(jnp.where(logit_mask, head, -jnp.inf), axis=-1, keepdims=True)
    z = head - m_row
    sumexp = jnp.sum(jnp.where(logit_mask, jnp.exp(z), 0.0), axis=-1, keepdims=True)
    logp = z - jnp.log(sumexp)
    probs = jnp.exp(logp)

    # single full-width lane-select + one unmasked 128-lane store:
    #   lanes [0,A)      -> probs
    #   lanes [A,2A)     -> log-probs (head duplicates logits there)
    #   lanes [2A, ...)  -> value | pos | exact zeros (zero-packed weights)
    out_ref[...] = jnp.where(logit_mask, probs,
                             jnp.where(out_lane < 2 * A, logp, head))


# --------------------------- parameter packing --------------------------------

PACKED_ORDER = ["w1", "vec1", "w2", "vec2", "hw1", "hvec1", "hw2", "hb2"]


def pack_params(params, k_pad, out_pad):
    """Pack the 26 per-layer tensors into 8 lane-dense slabs for the kernel.

    Matmul weights are stored bf16 (MXU operands); bias / LayerNorm vectors
    stay f32 (added / applied post-matmul in f32).
    """
    p = params
    A = p["pw2"].shape[1]
    P = p["lw2"].shape[1]
    H = p["pw1"].shape[1]                      # 64
    total_in = p["w1"].shape[0]
    f32, bf16 = jnp.float32, jnp.bfloat16

    w1 = jnp.zeros((k_pad, 256), f32).at[:total_in].set(p["w1"])
    packed = {
        "w1": w1.astype(bf16),                                               # (k_pad,256)
        "vec1": jnp.concatenate([p["b1"], p["g1"], p["be1"]], axis=0),       # (3,256)
        "w2": p["w2"].astype(bf16),                                          # (256,128)
        "vec2": jnp.concatenate([p["b2"], p["g2"], p["be2"]], axis=0),       # (3,128)
        "hw1": jnp.concatenate([p["pw1"], p["vw1"], p["lw1"]], axis=1).astype(bf16),  # (128,192)
        "hvec1": jnp.concatenate([
            jnp.concatenate([p["pb1"], p["vb1"], p["lb1"]], axis=1),
            jnp.concatenate([p["pg"], p["vg"], p["lg"]], axis=1),
            jnp.concatenate([p["pbe"], p["vbe"], p["lbe"]], axis=1),
        ], axis=0),                                                          # (3,192)
    }
    # Block-diagonal head-2 weights in final output lane positions; the policy
    # columns are duplicated at lanes [A, 2A) so logp needs no lane shuffle.
    hw2 = jnp.zeros((3 * H, out_pad), f32)
    hw2 = hw2.at[0:H, 0:A].set(p["pw2"])
    hw2 = hw2.at[0:H, A:2 * A].set(p["pw2"])
    hw2 = hw2.at[H:2 * H, 2 * A:2 * A + 1].set(p["vw2"])
    hw2 = hw2.at[2 * H:3 * H, 2 * A + 1:2 * A + 1 + P].set(p["lw2"])
    hb2 = jnp.zeros((1, out_pad), f32)
    hb2 = hb2.at[:, 0:A].set(p["pb2"])
    hb2 = hb2.at[:, A:2 * A].set(p["pb2"])
    hb2 = hb2.at[:, 2 * A:2 * A + 1].set(p["vb2"])
    hb2 = hb2.at[:, 2 * A + 1:2 * A + 1 + P].set(p["lb2"])
    packed["hw2"] = hw2.astype(bf16)
    packed["hb2"] = hb2
    return packed


# -------------------------------- wrapper -------------------------------------

def ppo_forward(x_dict, params, *, tile_b=1024):
    def flat(a):
        return a.reshape(a.shape[0], -1)

    # Fuse map/tanks/bullets into one slab during the flatten/astype pass.
    x = jnp.concatenate(
        [flat(x_dict["map"]), flat(x_dict["tanks"]), flat(x_dict["bullets"])],
        axis=1).astype(jnp.float32)
    B, total_in = x.shape

    A = params["pw2"].shape[1]
    P = params["lw2"].shape[1]
    out_pad = _round_up(max(2 * A + 1 + P, 128), 128)
    k_pad = _round_up(max(total_in, 128), 128)

    packed = pack_params(params, k_pad, out_pad)

    # Batch tiling: big tiles amortize per-grid-step pipeline overhead; force
    # >= 2 grid steps when the batch allows so ("parallel",) can use both
    # TensorCores on v7x.
    TILE_B = min(tile_b, _round_up(B, 8))
    if B >= 16 and _round_up(B, TILE_B) // TILE_B < 2:
        TILE_B = _round_up((B + 1) // 2, 8)
    B_pad = _round_up(B, TILE_B)
    num_tiles = B_pad // TILE_B

    # One lane-dense, zero-padded bf16 input slab (MXU operand dtype).
    x = jnp.pad(x, ((0, B_pad - B), (0, k_pad - total_in))).astype(jnp.bfloat16)

    def resident_spec(shape):
        return pl.BlockSpec(shape, lambda i: (0, 0))

    in_specs = [pl.BlockSpec((TILE_B, k_pad), lambda i: (i, 0))]
    in_specs += [resident_spec(tuple(packed[k].shape)) for k in PACKED_ORDER]

    kernel = functools.partial(ppo_kernel, action_dim=A, head_width=64)

    out = pl.pallas_call(
        kernel,
        out_shape=jax.ShapeDtypeStruct((B_pad, out_pad), jnp.float32),
        grid=(num_tiles,),
        in_specs=in_specs,
        out_specs=pl.BlockSpec((TILE_B, out_pad), lambda i: (i, 0)),
        compiler_params=pltpu.CompilerParams(
            dimension_semantics=("parallel",),
            vmem_limit_bytes=32 * 1024 * 1024),
    )(x, *[packed[k] for k in PACKED_ORDER])

    out = out[:B]
    probs = out[:, 0:A]
    logp = out[:, A:2 * A]
    value = out[:, 2 * A:2 * A + 1]
    pos = out[:, 2 * A + 1:2 * A + 1 + P]
    return probs, logp, value, pos


# --------------------------- parameter construction ---------------------------

def init_params(key, total_input, action_dim, logic_pos_dim):
    """Matches the PyTorch init: orthogonal(gain=sqrt(2)) weights, zero biases,
    LayerNorm weight=1 / bias=0. Linear weights stored (in, out)."""
    gain = float(np.sqrt(2.0))
    ortho = jax.nn.initializers.orthogonal(scale=gain)
    keys = iter(jax.random.split(key, 16))

    def lin(in_f, out_f):
        w = ortho(next(keys), (in_f, out_f), jnp.float32)
        b = jnp.zeros((1, out_f), jnp.float32)
        return w, b

    def ln(n):
        return jnp.ones((1, n), jnp.float32), jnp.zeros((1, n), jnp.float32)

    p = {}
    p["w1"], p["b1"] = lin(total_input, 256)
    p["g1"], p["be1"] = ln(256)
    p["w2"], p["b2"] = lin(256, 128)
    p["g2"], p["be2"] = ln(128)

    p["pw1"], p["pb1"] = lin(128, 64)
    p["pg"], p["pbe"] = ln(64)
    p["pw2"], p["pb2"] = lin(64, action_dim)

    p["vw1"], p["vb1"] = lin(128, 64)
    p["vg"], p["vbe"] = ln(64)
    p["vw2"], p["vb2"] = lin(64, 1)

    p["lw1"], p["lb1"] = lin(128, 64)
    p["lg"], p["lbe"] = ln(64)
    p["lw2"], p["lb2"] = lin(64, logic_pos_dim)
    return p


# ------------------------------ pure-JAX reference ----------------------------

def ppo_reference(x_dict, params, matmul_dtype=jnp.float32):
    """Reference forward. matmul_dtype=bf16 reproduces the kernel's
    operand-boundary casting (everything else stays f32)."""
    def flat(a):
        return a.reshape(a.shape[0], -1)

    x = jnp.concatenate(
        [flat(x_dict["map"]), flat(x_dict["tanks"]), flat(x_dict["bullets"])], axis=1
    ).astype(jnp.float32)

    def mm(a, w):
        return jnp.dot(a.astype(matmul_dtype), w.astype(matmul_dtype),
                       preferred_element_type=jnp.float32)

    def lnorm(x, g, b, eps=1e-5):
        mu = jnp.mean(x, -1, keepdims=True)
        var = jnp.mean((x - mu) ** 2, -1, keepdims=True)
        return (x - mu) / jnp.sqrt(var + eps) * g + b

    def block(x, w, b, g, be):
        return jax.nn.relu(lnorm(mm(x, w) + b, g, be))

    p = params
    h = block(x, p["w1"], p["b1"], p["g1"], p["be1"])
    h = block(h, p["w2"], p["b2"], p["g2"], p["be2"])
    logits = mm(block(h, p["pw1"], p["pb1"], p["pg"], p["pbe"]), p["pw2"]) + p["pb2"]
    logp = jax.nn.log_softmax(logits, axis=-1)
    value = mm(block(h, p["vw1"], p["vb1"], p["vg"], p["vbe"]), p["vw2"]) + p["vb2"]
    pos = mm(block(h, p["lw1"], p["lb1"], p["lg"], p["lbe"]), p["lw2"]) + p["lb2"]
    return jnp.exp(logp), logp, value, pos


# ---------------------------------- main ---------------------------------------

if __name__ == "__main__":
    input_shape = {"map": (8, 8), "tanks": (4, 4), "bullets": (4, 2)}
    batch = 2
    action_dim = 6
    logic_pos_dim = 2
    total_input = int(
        np.prod(input_shape["map"])
        + np.prod(input_shape["tanks"])
        + np.prod(input_shape["bullets"])
    )  # 64 + 16 + 8 = 88

    key = jax.random.PRNGKey(0)
    k_map, k_tanks, k_bullets, k_params = jax.random.split(key, 4)

    x = {
        "map": jax.random.normal(k_map, (batch,) + input_shape["map"], jnp.float32),
        "tanks": jax.random.normal(k_tanks, (batch,) + input_shape["tanks"], jnp.float32),
        "bullets": jax.random.normal(k_bullets, (batch,) + input_shape["bullets"], jnp.float32),
    }

    params = init_params(k_params, total_input, action_dim, logic_pos_dim)

    probs, log_probs, value, logic_pos = jax.block_until_ready(ppo_forward(x, params))

    # Matched-numerics check (bf16 matmul operands, f32 elsewhere) — validates
    # the kernel structure (fused K=128 layer 1, masked segmented LN, packed
    # block-diagonal heads, mask-based softmax epilogue) tightly.
    m_probs, m_logp, m_value, m_pos = ppo_reference(x, params, matmul_dtype=jnp.bfloat16)
    np.testing.assert_allclose(np.asarray(probs), np.asarray(m_probs), rtol=5e-3, atol=5e-3)
    np.testing.assert_allclose(np.asarray(log_probs), np.asarray(m_logp), rtol=5e-3, atol=5e-3)
    np.testing.assert_allclose(np.asarray(value), np.asarray(m_value), rtol=5e-3, atol=5e-3)
    np.testing.assert_allclose(np.asarray(logic_pos), np.asarray(m_pos), rtol=5e-3, atol=5e-3)

    # Loose sanity check against the pure-f32 (PyTorch-equivalent) reference;
    # bf16 MXU operands trade ~1e-2 accuracy for 3-4x matmul throughput.
    f_probs, f_logp, f_value, f_pos = ppo_reference(x, params)
    np.testing.assert_allclose(np.asarray(probs), np.asarray(f_probs), rtol=1e-1, atol=5e-2)
    np.testing.assert_allclose(np.asarray(log_probs), np.asarray(f_logp), rtol=1e-1, atol=5e-2)
    np.testing.assert_allclose(np.asarray(value), np.asarray(f_value), rtol=1e-1, atol=5e-2)
    np.testing.assert_allclose(np.asarray(logic_pos), np.asarray(f_pos), rtol=1e-1, atol=5e-2)

    assert np.allclose(np.asarray(probs).sum(-1), 1.0, atol=1e-4)

    print("KERNEL_OK")
</pallas_src>

<mosaic_0001>
module attributes {stable_mosaic.version = 11 : i64} {
  func.func @ppo_kernel(%arg0: i32, %arg1: memref<8x128xbf16, #tpu.memory_space<vmem>>, %arg2: memref<128x256xbf16, #tpu.memory_space<vmem>>, %arg3: memref<3x256xf32, #tpu.memory_space<vmem>>, %arg4: memref<256x128xbf16, #tpu.memory_space<vmem>>, %arg5: memref<3x128xf32, #tpu.memory_space<vmem>>, %arg6: memref<128x192xbf16, #tpu.memory_space<vmem>>, %arg7: memref<3x192xf32, #tpu.memory_space<vmem>>, %arg8: memref<192x128xbf16, #tpu.memory_space<vmem>>, %arg9: memref<1x128xf32, #tpu.memory_space<vmem>>, %arg10: memref<8x128xf32, #tpu.memory_space<vmem>>) attributes {dimension_semantics = [#tpu.dimension_semantics<parallel>], iteration_bounds = array<i64: 1>, scalar_prefetch = 0 : i64, scratch_operands = 0 : i64, tpu.core_type = #tpu.core_type<tc>, window_params = [{transform_indices = @transform_0, window_bounds = array<i64: 8, 128>}, {pipeline_mode = #tpu.pipeline_mode<synchronous>, transform_indices = @transform_1, window_bounds = array<i64: 128, 256>}, {pipeline_mode = #tpu.pipeline_mode<synchronous>, transform_indices = @transform_2, window_bounds = array<i64: 3, 256>}, {pipeline_mode = #tpu.pipeline_mode<synchronous>, transform_indices = @transform_3, window_bounds = array<i64: 256, 128>}, {pipeline_mode = #tpu.pipeline_mode<synchronous>, transform_indices = @transform_4, window_bounds = array<i64: 3, 128>}, {pipeline_mode = #tpu.pipeline_mode<synchronous>, transform_indices = @transform_5, window_bounds = array<i64: 128, 192>}, {pipeline_mode = #tpu.pipeline_mode<synchronous>, transform_indices = @transform_6, window_bounds = array<i64: 3, 192>}, {pipeline_mode = #tpu.pipeline_mode<synchronous>, transform_indices = @transform_7, window_bounds = array<i64: 192, 128>}, {pipeline_mode = #tpu.pipeline_mode<synchronous>, transform_indices = @transform_8, window_bounds = array<i64: 1, 128>}, {transform_indices = @transform_9, window_bounds = array<i64: 8, 128>}]} {
    %c0 = arith.constant 0 : index
    %c0_0 = arith.constant 0 : index
    %0 = vector.load %arg3[%c0, %c0_0] : memref<3x256xf32, #tpu.memory_space<vmem>>, vector<3x256xf32>
    %1 = vector.extract_strided_slice %0 {offsets = [0, 0], sizes = [1, 256], strides = [1, 1]} : vector<3x256xf32> to vector<1x256xf32>
    %2 = vector.extract_strided_slice %0 {offsets = [1, 0], sizes = [1, 256], strides = [1, 1]} : vector<3x256xf32> to vector<1x256xf32>
    %3 = vector.extract_strided_slice %0 {offsets = [2, 0], sizes = [1, 256], strides = [1, 1]} : vector<3x256xf32> to vector<1x256xf32>
    %c0_1 = arith.constant 0 : index
    %c0_2 = arith.constant 0 : index
    %4 = vector.load %arg1[%c0_1, %c0_2] : memref<8x128xbf16, #tpu.memory_space<vmem>>, vector<8x128xbf16>
    %c0_3 = arith.constant 0 : index
    %c0_4 = arith.constant 0 : index
    %5 = vector.load %arg2[%c0_3, %c0_4] : memref<128x256xbf16, #tpu.memory_space<vmem>>, vector<128x256xbf16>
    %cst = arith.constant dense<0.000000e+00> : vector<8x256xf32>
    %6 = tpu.matmul %4, %5, %cst {dimension_numbers = #tpu.dot_dimension_numbers<[1], [0], [0], [1], [0, 0, 1, 1], [], []>} : vector<8x128xbf16>, vector<128x256xbf16>, vector<8x256xf32> -> vector<8x256xf32>
    %7 = vector.broadcast %1 : vector<1x256xf32> to vector<8x256xf32>
    %8 = arith.addf %6, %7 : vector<8x256xf32>
    %cst_5 = arith.constant dense<0.000000e+00> : vector<8xf32>
    %9 = vector.multi_reduction <add>, %8, %cst_5 [1] : vector<8x256xf32> to vector<8xf32>
    %10 = vector.shape_cast %9 : vector<8xf32> to vector<8x1xf32>
    %cst_6 = arith.constant 2.560000e+02 : f32
    %11 = vector.broadcast %cst_6 : f32 to vector<8x1xf32>
    %12 = arith.divf %10, %11 : vector<8x1xf32>
    %13 = vector.broadcast %12 : vector<8x1xf32> to vector<8x256xf32>
    %14 = arith.subf %8, %13 : vector<8x256xf32>
    %15 = arith.mulf %14, %14 : vector<8x256xf32>
    %cst_7 = arith.constant dense<0.000000e+00> : vector<8xf32>
    %16 = vector.multi_reduction <add>, %15, %cst_7 [1] : vector<8x256xf32> to vector<8xf32>
    %17 = vector.shape_cast %16 : vector<8xf32> to vector<8x1xf32>
    %cst_8 = arith.constant 2.560000e+02 : f32
    %18 = vector.broadcast %cst_8 : f32 to vector<8x1xf32>
    %19 = arith.divf %17, %18 : vector<8x1xf32>
    %cst_9 = arith.constant 9.99999974E-6 : f32
    %20 = vector.broadcast %cst_9 : f32 to vector<8x1xf32>
    %21 = arith.addf %19, %20 : vector<8x1xf32>
    %22 = math.rsqrt %21 : vector<8x1xf32>
    %23 = vector.broadcast %22 : vector<8x1xf32> to vector<8x256xf32>
    %24 = arith.mulf %14, %23 : vector<8x256xf32>
    %25 = vector.broadcast %2 : vector<1x256xf32> to vector<8x256xf32>
    %26 = arith.mulf %24, %25 : vector<8x256xf32>
    %27 = vector.broadcast %3 : vector<1x256xf32> to vector<8x256xf32>
    %28 = arith.addf %26, %27 : vector<8x256xf32>
    %cst_10 = arith.constant 0.000000e+00 : f32
    %29 = vector.broadcast %cst_10 : f32 to vector<8x256xf32>
    %30 = arith.maximumf %28, %29 : vector<8x256xf32>
    %c0_11 = arith.constant 0 : index
    %c0_12 = arith.constant 0 : index
    %31 = vector.load %arg5[%c0_11, %c0_12] : memref<3x128xf32, #tpu.memory_space<vmem>>, vector<3x128xf32>
    %32 = vector.extract_strided_slice %31 {offsets = [0, 0], sizes = [1, 128], strides = [1, 1]} : vector<3x128xf32> to vector<1x128xf32>
    %33 = vector.extract_strided_slice %31 {offsets = [1, 0], sizes = [1, 128], strides = [1, 1]} : vector<3x128xf32> to vector<1x128xf32>
    %34 = vector.extract_strided_slice %31 {offsets = [2, 0], sizes = [1, 128], strides = [1, 1]} : vector<3x128xf32> to vector<1x128xf32>
    %35 = arith.truncf %30 : vector<8x256xf32> to vector<8x256xbf16>
    %c0_13 = arith.constant 0 : index
    %c0_14 = arith.constant 0 : index
    %36 = vector.load %arg4[%c0_13, %c0_14] : memref<256x128xbf16, #tpu.memory_space<vmem>>, vector<256x128xbf16>
    %cst_15 = arith.constant dense<0.000000e+00> : vector<8x128xf32>
    %37 = tpu.matmul %35, %36, %cst_15 {dimension_numbers = #tpu.dot_dimension_numbers<[1], [0], [0], [1], [0, 0, 1, 1], [], []>} : vector<8x256xbf16>, vector<256x128xbf16>, vector<8x128xf32> -> vector<8x128xf32>
    %38 = vector.broadcast %32 : vector<1x128xf32> to vector<8x128xf32>
    %39 = arith.addf %37, %38 : vector<8x128xf32>
    %cst_16 = arith.constant dense<0.000000e+00> : vector<8xf32>
    %40 = vector.multi_reduction <add>, %39, %cst_16 [1] : vector<8x128xf32> to vector<8xf32>
    %41 = vector.shape_cast %40 : vector<8xf32> to vector<8x1xf32>
    %cst_17 = arith.constant 1.280000e+02 : f32
    %42 = vector.broadcast %cst_17 : f32 to vector<8x1xf32>
    %43 = arith.divf %41, %42 : vector<8x1xf32>
    %44 = vector.broadcast %43 : vector<8x1xf32> to vector<8x128xf32>
    %45 = arith.subf %39, %44 : vector<8x128xf32>
    %46 = arith.mulf %45, %45 : vector<8x128xf32>
    %cst_18 = arith.constant dense<0.000000e+00> : vector<8xf32>
    %47 = vector.multi_reduction <add>, %46, %cst_18 [1] : vector<8x128xf32> to vector<8xf32>
    %48 = vector.shape_cast %47 : vector<8xf32> to vector<8x1xf32>
    %cst_19 = arith.constant 1.280000e+02 : f32
    %49 = vector.broadcast %cst_19 : f32 to vector<8x1xf32>
    %50 = arith.divf %48, %49 : vector<8x1xf32>
    %cst_20 = arith.constant 9.99999974E-6 : f32
    %51 = vector.broadcast %cst_20 : f32 to vector<8x1xf32>
    %52 = arith.addf %50, %51 : vector<8x1xf32>
    %53 = math.rsqrt %52 : vector<8x1xf32>
    %54 = vector.broadcast %53 : vector<8x1xf32> to vector<8x128xf32>
    %55 = arith.mulf %45, %54 : vector<8x128xf32>
    %56 = vector.broadcast %33 : vector<1x128xf32> to vector<8x128xf32>
    %57 = arith.mulf %55, %56 : vector<8x128xf32>
    %58 = vector.broadcast %34 : vector<1x128xf32> to vector<8x128xf32>
    %59 = arith.addf %57, %58 : vector<8x128xf32>
    %cst_21 = arith.constant 0.000000e+00 : f32
    %60 = vector.broadcast %cst_21 : f32 to vector<8x128xf32>
    %61 = arith.maximumf %59, %60 : vector<8x128xf32>
    %c0_22 = arith.constant 0 : index
    %c0_23 = arith.constant 0 : index
    %62 = vector.load %arg7[%c0_22, %c0_23] : memref<3x192xf32, #tpu.memory_space<vmem>>, vector<3x192xf32>
    %63 = vector.extract_strided_slice %62 {offsets = [0, 0], sizes = [1, 192], strides = [1, 1]} : vector<3x192xf32> to vector<1x192xf32>
    %64 = vector.extract_strided_slice %62 {offsets = [1, 0], sizes = [1, 192], strides = [1, 1]} : vector<3x192xf32> to vector<1x192xf32>
    %65 = vector.extract_strided_slice %62 {offsets = [2, 0], sizes = [1, 192], strides = [1, 1]} : vector<3x192xf32> to vector<1x192xf32>
    %66 = arith.truncf %61 : vector<8x128xf32> to vector<8x128xbf16>
    %c0_24 = arith.constant 0 : index
    %c0_25 = arith.constant 0 : index
    %67 = vector.load %arg6[%c0_24, %c0_25] : memref<128x192xbf16, #tpu.memory_space<vmem>>, vector<128x192xbf16>
    %cst_26 = arith.constant dense<0.000000e+00> : vector<8x192xf32>
    %68 = tpu.matmul %66, %67, %cst_26 {dimension_numbers = #tpu.dot_dimension_numbers<[1], [0], [0], [1], [0, 0, 1, 1], [], []>} : vector<8x128xbf16>, vector<128x192xbf16>, vector<8x192xf32> -> vector<8x192xf32>
    %69 = vector.broadcast %63 : vector<1x192xf32> to vector<8x192xf32>
    %70 = arith.addf %68, %69 : vector<8x192xf32>
    %71 = tpu.iota {dimensions = array<i32: 1>} : vector<1x192xi32>
    %cst_27 = arith.constant 0.000000e+00 : f32
    %72 = vector.broadcast %cst_27 : f32 to vector<8x192xf32>
    %c0_i32 = arith.constant 0 : i32
    %73 = vector.broadcast %c0_i32 : i32 to vector<1x192xi32>
    %74 = arith.cmpi sge, %71, %73 : vector<1x192xi32>
    %c64_i32 = arith.constant 64 : i32
    %75 = vector.broadcast %c64_i32 : i32 to vector<1x192xi32>
    %76 = arith.cmpi slt, %71, %75 : vector<1x192xi32>
    %77 = arith.andi %74, %76 : vector<1x192xi1>
    %78 = arith.extui %77 : vector<1x192xi1> to vector<1x192xi32>
    %79 = arith.sitofp %78 : vector<1x192xi32> to vector<1x192xf32>
    %80 = vector.broadcast %79 : vector<1x192xf32> to vector<8x192xf32>
    %81 = arith.mulf %70, %80 : vector<8x192xf32>
    %cst_28 = arith.constant dense<0.000000e+00> : vector<8xf32>
    %82 = vector.multi_reduction <add>, %81, %cst_28 [1] : vector<8x192xf32> to vector<8xf32>
    %83 = vector.shape_cast %82 : vector<8xf32> to vector<8x1xf32>
    %cst_29 = arith.constant 1.562500e-02 : f32
    %84 = vector.broadcast %cst_29 : f32 to vector<8x1xf32>
    %85 = arith.mulf %83, %84 : vector<8x1xf32>
    %86 = vector.broadcast %85 : vector<8x1xf32> to vector<8x192xf32>
    %87 = vector.broadcast %79 : vector<1x192xf32> to vector<8x192xf32>
    %88 = arith.mulf %86, %87 : vector<8x192xf32>
    %89 = arith.addf %72, %88 : vector<8x192xf32>
    %c64_i32_30 = arith.constant 64 : i32
    %90 = vector.broadcast %c64_i32_30 : i32 to vector<1x192xi32>
    %91 = arith.cmpi sge, %71, %90 : vector<1x192xi32>
    %c128_i32 = arith.constant 128 : i32
    %92 = vector.broadcast %c128_i32 : i32 to vector<1x192xi32>
    %93 = arith.cmpi slt, %71, %92 : vector<1x192xi32>
    %94 = arith.andi %91, %93 : vector<1x192xi1>
    %95 = arith.extui %94 : vector<1x192xi1> to vector<1x192xi32>
    %96 = arith.sitofp %95 : vector<1x192xi32> to vector<1x192xf32>
    %97 = vector.broadcast %96 : vector<1x192xf32> to vector<8x192xf32>
    %98 = arith.mulf %70, %97 : vector<8x192xf32>
    %cst_31 = arith.constant dense<0.000000e+00> : vector<8xf32>
    %99 = vector.multi_reduction <add>, %98, %cst_31 [1] : vector<8x192xf32> to vector<8xf32>
    %100 = vector.shape_cast %99 : vector<8xf32> to vector<8x1xf32>
    %cst_32 = arith.constant 1.562500e-02 : f32
    %101 = vector.broadcast %cst_32 : f32 to vector<8x1xf32>
    %102 = arith.mulf %100, %101 : vector<8x1xf32>
    %103 = vector.broadcast %102 : vector<8x1xf32> to vector<8x192xf32>
    %104 = vector.broadcast %96 : vector<1x192xf32> to vector<8x192xf32>
    %105 = arith.mulf %103, %104 : vector<8x192xf32>
    %106 = arith.addf %89, %105 : vector<8x192xf32>
    %c128_i32_33 = arith.constant 128 : i32
    %107 = vector.broadcast %c128_i32_33 : i32 to vector<1x192xi32>
    %108 = arith.cmpi sge, %71, %107 : vector<1x192xi32>
    %c192_i32 = arith.constant 192 : i32
    %109 = vector.broadcast %c192_i32 : i32 to vector<1x192xi32>
    %110 = arith.cmpi slt, %71, %109 : vector<1x192xi32>
    %111 = arith.andi %108, %110 : vector<1x192xi1>
    %112 = arith.extui %111 : vector<1x192xi1> to vector<1x192xi32>
    %113 = arith.sitofp %112 : vector<1x192xi32> to vector<1x192xf32>
    %114 = vector.broadcast %113 : vector<1x192xf32> to vector<8x192xf32>
    %115 = arith.mulf %70, %114 : vector<8x192xf32>
    %cst_34 = arith.constant dense<0.000000e+00> : vector<8xf32>
    %116 = vector.multi_reduction <add>, %115, %cst_34 [1] : vector<8x192xf32> to vector<8xf32>
    %117 = vector.shape_cast %116 : vector<8xf32> to vector<8x1xf32>
    %cst_35 = arith.constant 1.562500e-02 : f32
    %118 = vector.broadcast %cst_35 : f32 to vector<8x1xf32>
    %119 = arith.mulf %117, %118 : vector<8x1xf32>
    %120 = vector.broadcast %119 : vector<8x1xf32> to vector<8x192xf32>
    %121 = vector.broadcast %113 : vector<1x192xf32> to vector<8x192xf32>
    %122 = arith.mulf %120, %121 : vector<8x192xf32>
    %123 = arith.addf %106, %122 : vector<8x192xf32>
    %124 = arith.subf %70, %123 : vector<8x192xf32>
    %cst_36 = arith.constant 0.000000e+00 : f32
    %125 = vector.broadcast %cst_36 : f32 to vector<8x192xf32>
    %c0_i32_37 = arith.constant 0 : i32
    %126 = vector.broadcast %c0_i32_37 : i32 to vector<1x192xi32>
    %127 = arith.cmpi sge, %71, %126 : vector<1x192xi32>
    %c64_i32_38 = arith.constant 64 : i32
    %128 = vector.broadcast %c64_i32_38 : i32 to vector<1x192xi32>
    %129 = arith.cmpi slt, %71, %128 : vector<1x192xi32>
    %130 = arith.andi %127, %129 : vector<1x192xi1>
    %131 = arith.extui %130 : vector<1x192xi1> to vector<1x192xi32>
    %132 = arith.sitofp %131 : vector<1x192xi32> to vector<1x192xf32>
    %133 = arith.mulf %124, %124 : vector<8x192xf32>
    %134 = vector.broadcast %132 : vector<1x192xf32> to vector<8x192xf32>
    %135 = arith.mulf %133, %134 : vector<8x192xf32>
    %cst_39 = arith.constant dense<0.000000e+00> : vector<8xf32>
    %136 = vector.multi_reduction <add>, %135, %cst_39 [1] : vector<8x192xf32> to vector<8xf32>
    %137 = vector.shape_cast %136 : vector<8xf32> to vector<8x1xf32>
    %cst_40 = arith.constant 1.562500e-02 : f32
    %138 = vector.broadcast %cst_40 : f32 to vector<8x1xf32>
    %139 = arith.mulf %137, %138 : vector<8x1xf32>
    %140 = vector.broadcast %139 : vector<8x1xf32> to vector<8x192xf32>
    %141 = vector.broadcast %132 : vector<1x192xf32> to vector<8x192xf32>
    %142 = arith.mulf %140, %141 : vector<8x192xf32>
    %143 = arith.addf %125, %142 : vector<8x192xf32>
    %c64_i32_41 = arith.constant 64 : i32
    %144 = vector.broadcast %c64_i32_41 : i32 to vector<1x192xi32>
    %145 = arith.cmpi sge, %71, %144 : vector<1x192xi32>
    %c128_i32_42 = arith.constant 128 : i32
    %146 = vector.broadcast %c128_i32_42 : i32 to vector<1x192xi32>
    %147 = arith.cmpi slt, %71, %146 : vector<1x192xi32>
    %148 = arith.andi %145, %147 : vector<1x192xi1>
    %149 = arith.extui %148 : vector<1x192xi1> to vector<1x192xi32>
    %150 = arith.sitofp %149 : vector<1x192xi32> to vector<1x192xf32>
    %151 = arith.mulf %124, %124 : vector<8x192xf32>
    %152 = vector.broadcast %150 : vector<1x192xf32> to vector<8x192xf32>
    %153 = arith.mulf %151, %152 : vector<8x192xf32>
    %cst_43 = arith.constant dense<0.000000e+00> : vector<8xf32>
    %154 = vector.multi_reduction <add>, %153, %cst_43 [1] : vector<8x192xf32> to vector<8xf32>
    %155 = vector.shape_cast %154 : vector<8xf32> to vector<8x1xf32>
    %cst_44 = arith.constant 1.562500e-02 : f32
    %156 = vector.broadcast %cst_44 : f32 to vector<8x1xf32>
    %157 = arith.mulf %155, %156 : vector<8x1xf32>
    %158 = vector.broadcast %157 : vector<8x1xf32> to vector<8x192xf32>
    %159 = vector.broadcast %150 : vector<1x192xf32> to vector<8x192xf32>
    %160 = arith.mulf %158, %159 : vector<8x192xf32>
    %161 = arith.addf %143, %160 : vector<8x192xf32>
    %c128_i32_45 = arith.constant 128 : i32
    %162 = vector.broadcast %c128_i32_45 : i32 to vector<1x192xi32>
    %163 = arith.cmpi sge, %71, %162 : vector<1x192xi32>
    %c192_i32_46 = arith.constant 192 : i32
    %164 = vector.broadcast %c192_i32_46 : i32 to vector<1x192xi32>
    %165 = arith.cmpi slt, %71, %164 : vector<1x192xi32>
    %166 = arith.andi %163, %165 : vector<1x192xi1>
    %167 = arith.extui %166 : vector<1x192xi1> to vector<1x192xi32>
    %168 = arith.sitofp %167 : vector<1x192xi32> to vector<1x192xf32>
    %169 = arith.mulf %124, %124 : vector<8x192xf32>
    %170 = vector.broadcast %168 : vector<1x192xf32> to vector<8x192xf32>
    %171 = arith.mulf %169, %170 : vector<8x192xf32>
    %cst_47 = arith.constant dense<0.000000e+00> : vector<8xf32>
    %172 = vector.multi_reduction <add>, %171, %cst_47 [1] : vector<8x192xf32> to vector<8xf32>
    %173 = vector.shape_cast %172 : vector<8xf32> to vector<8x1xf32>
    %cst_48 = arith.constant 1.562500e-02 : f32
    %174 = vector.broadcast %cst_48 : f32 to vector<8x1xf32>
    %175 = arith.mulf %173, %174 : vector<8x1xf32>
    %176 = vector.broadcast %175 : vector<8x1xf32> to vector<8x192xf32>
    %177 = vector.broadcast %168 : vector<1x192xf32> to vector<8x192xf32>
    %178 = arith.mulf %176, %177 : vector<8x192xf32>
    %179 = arith.addf %161, %178 : vector<8x192xf32>
    %cst_49 = arith.constant 9.99999974E-6 : f32
    %180 = vector.broadcast %cst_49 : f32 to vector<8x192xf32>
    %181 = arith.addf %179, %180 : vector<8x192xf32>
    %182 = math.rsqrt %181 : vector<8x192xf32>
    %183 = arith.mulf %124, %182 : vector<8x192xf32>
    %184 = vector.broadcast %64 : vector<1x192xf32> to vector<8x192xf32>
    %185 = arith.mulf %183, %184 : vector<8x192xf32>
    %186 = vector.broadcast %65 : vector<1x192xf32> to vector<8x192xf32>
    %187 = arith.addf %185, %186 : vector<8x192xf32>
    %cst_50 = arith.constant 0.000000e+00 : f32
    %188 = vector.broadcast %cst_50 : f32 to vector<8x192xf32>
    %189 = arith.maximumf %187, %188 : vector<8x192xf32>
    %190 = arith.truncf %189 : vector<8x192xf32> to vector<8x192xbf16>
    %c0_51 = arith.constant 0 : index
    %c0_52 = arith.constant 0 : index
    %191 = vector.load %arg8[%c0_51, %c0_52] : memref<192x128xbf16, #tpu.memory_space<vmem>>, vector<192x128xbf16>
    %cst_53 = arith.constant dense<0.000000e+00> : vector<8x128xf32>
    %192 = tpu.matmul %190, %191, %cst_53 {dimension_numbers = #tpu.dot_dimension_numbers<[1], [0], [0], [1], [0, 0, 1, 1], [], []>} : vector<8x192xbf16>, vector<192x128xbf16>, vector<8x128xf32> -> vector<8x128xf32>
    %c0_54 = arith.constant 0 : index
    %c0_55 = arith.constant 0 : index
    %193 = vector.load %arg9[%c0_54, %c0_55] : memref<1x128xf32, #tpu.memory_space<vmem>>, vector<1x128xf32>
    %194 = vector.broadcast %193 : vector<1x128xf32> to vector<8x128xf32>
    %195 = arith.addf %192, %194 : vector<8x128xf32>
    %196 = tpu.iota {dimensions = array<i32: 1>} : vector<1x128xi32>
    %c6_i32 = arith.constant 6 : i32
    %197 = vector.broadcast %c6_i32 : i32 to vector<1x128xi32>
    %198 = arith.cmpi slt, %196, %197 : vector<1x128xi32>
    %cst_56 = arith.constant 0xFF800000 : f32
    %199 = vector.shape_cast %198 : vector<1x128xi1> to vector<1x128xi1>
    %200 = vector.broadcast %199 : vector<1x128xi1> to vector<8x128xi1>
    %201 = vector.broadcast %cst_56 : f32 to vector<8x128xf32>
    %202 = arith.select %200, %195, %201 : vector<8x128xi1>, vector<8x128xf32>
    %cst_57 = arith.constant dense<0xFF800000> : vector<8xf32>
    %203 = vector.multi_reduction <maximumf>, %202, %cst_57 [1] : vector<8x128xf32> to vector<8xf32>
    %204 = vector.shape_cast %203 : vector<8xf32> to vector<8x1xf32>
    %205 = vector.broadcast %204 : vector<8x1xf32> to vector<8x128xf32>
    %206 = arith.subf %195, %205 : vector<8x128xf32>
    %207 = math.exp %206 : vector<8x128xf32>
    %cst_58 = arith.constant 0.000000e+00 : f32
    %208 = vector.shape_cast %198 : vector<1x128xi1> to vector<1x128xi1>
    %209 = vector.broadcast %208 : vector<1x128xi1> to vector<8x128xi1>
    %210 = vector.broadcast %cst_58 : f32 to vector<8x128xf32>
    %211 = arith.select %209, %207, %210 : vector<8x128xi1>, vector<8x128xf32>
    %cst_59 = arith.constant dense<0.000000e+00> : vector<8xf32>
    %212 = vector.multi_reduction <add>, %211, %cst_59 [1] : vector<8x128xf32> to vector<8xf32>
    %213 = vector.shape_cast %212 : vector<8xf32> to vector<8x1xf32>
    %214 = math.log %213 : vector<8x1xf32>
    %215 = vector.broadcast %214 : vector<8x1xf32> to vector<8x128xf32>
    %216 = arith.subf %206, %215 : vector<8x128xf32>
    %217 = math.exp %216 : vector<8x128xf32>
    %c12_i32 = arith.constant 12 : i32
    %218 = vector.broadcast %c12_i32 : i32 to vector<1x128xi32>
    %219 = arith.cmpi slt, %196, %218 : vector<1x128xi32>
    %220 = vector.shape_cast %219 : vector<1x128xi1> to vector<1x128xi1>
    %221 = vector.broadcast %220 : vector<1x128xi1> to vector<8x128xi1>
    %222 = arith.select %221, %216, %195 : vector<8x128xi1>, vector<8x128xf32>
    %223 = vector.shape_cast %198 : vector<1x128xi1> to vector<1x128xi1>
    %224 = vector.broadcast %223 : vector<1x128xi1> to vector<8x128xi1>
    %225 = arith.select %224, %217, %222 : vector<8x128xi1>, vector<8x128xf32>
    %c0_60 = arith.constant 0 : index
    %c0_61 = arith.constant 0 : index
    %226 = vector.load %arg10[%c0_60, %c0_61] : memref<8x128xf32, #tpu.memory_space<vmem>>, vector<8x128xf32>
    tpu.vector_store %arg10[%c0_60, %c0_61], %225 {strides = array<i32>} : memref<8x128xf32, #tpu.memory_space<vmem>>, vector<8x128xf32>,
    return
  }
  func.func @transform_0(%arg0: i32) -> (i32, i32) {
    %c0_i32 = arith.constant 0 : i32
    %c0_i32_0 = arith.constant 0 : i32
    return %arg0, %c0_i32 : i32, i32
  }
  func.func @transform_1(%arg0: i32) -> (i32, i32) {
    %c0_i32 = arith.constant 0 : i32
    %c0_i32_0 = arith.constant 0 : i32
    %c0_i32_1 = arith.constant 0 : i32
    return %c0_i32, %c0_i32_0 : i32, i32
  }
  func.func @transform_2(%arg0: i32) -> (i32, i32) {
    %c0_i32 = arith.constant 0 : i32
    %c0_i32_0 = arith.constant 0 : i32
    %c0_i32_1 = arith.constant 0 : i32
    return %c0_i32, %c0_i32_0 : i32, i32
  }
  func.func @transform_3(%arg0: i32) -> (i32, i32) {
    %c0_i32 = arith.constant 0 : i32
    %c0_i32_0 = arith.constant 0 : i32
    %c0_i32_1 = arith.constant 0 : i32
    return %c0_i32, %c0_i32_0 : i32, i32
  }
  func.func @transform_4(%arg0: i32) -> (i32, i32) {
    %c0_i32 = arith.constant 0 : i32
    %c0_i32_0 = arith.constant 0 : i32
    %c0_i32_1 = arith.constant 0 : i32
    return %c0_i32, %c0_i32_0 : i32, i32
  }
  func.func @transform_5(%arg0: i32) -> (i32, i32) {
    %c0_i32 = arith.constant 0 : i32
    %c0_i32_0 = arith.constant 0 : i32
    %c0_i32_1 = arith.constant 0 : i32
    return %c0_i32, %c0_i32_0 : i32, i32
  }
  func.func @transform_6(%arg0: i32) -> (i32, i32) {
    %c0_i32 = arith.constant 0 : i32
    %c0_i32_0 = arith.constant 0 : i32
    %c0_i32_1 = arith.constant 0 : i32
    return %c0_i32, %c0_i32_0 : i32, i32
  }
  func.func @transform_7(%arg0: i32) -> (i32, i32) {
    %c0_i32 = arith.constant 0 : i32
    %c0_i32_0 = arith.constant 0 : i32
    %c0_i32_1 = arith.constant 0 : i32
    return %c0_i32, %c0_i32_0 : i32, i32
  }
  func.func @transform_8(%arg0: i32) -> (i32, i32) {
    %c0_i32 = arith.constant 0 : i32
    %c0_i32_0 = arith.constant 0 : i32
    %c0_i32_1 = arith.constant 0 : i32
    return %c0_i32, %c0_i32_0 : i32, i32
  }
  func.func @transform_9(%arg0: i32) -> (i32, i32) {
    %c0_i32 = arith.constant 0 : i32
    %c0_i32_0 = arith.constant 0 : i32
    return %arg0, %c0_i32 : i32, i32
  }
}

</mosaic_0001>

<bundles_post_ra>
// kernel: tpu_custom_call.1
= control target key start
LH: loop header
LB: loop body
LE: loop exit
PB: predicated region body
PF: predicated region fallthrough
CT: control target
= control target key end

     0   :  { %14 = vsyncpa [#allocation3], 0  ;;  %s1634_s0 = inlined_call_operand.hbm [shape: bf16[8,128], index: 0, kind: input, shape index: {}]   ;;  %s1635_s1 = inlined_call_operand.vmem [shape: bf16[128,256], index: 1, kind: input, shape index: {}]   ;;  %s1636_s2 = inlined_call_operand.hbm [shape: f32[3,256], index: 2, kind: input, shape index: {}]   ;;  %s1637_s3 = inlined_call_operand.hbm [shape: bf16[256,128], index: 3, kind: input, shape index: {}]   ;;  %s1638_s4 = inlined_call_operand.vmem [shape: f32[3,128], index: 4, kind: input, shape index: {}]   ;;  %s1639_s5 = inlined_call_operand.vmem [shape: bf16[128,192], index: 5, kind: input, shape index: {}]   ;;  %s1640_s6 = inlined_call_operand.vmem [shape: f32[3,192], index: 6, kind: input, shape index: {}]   ;;  %s1641_s7 = inlined_call_operand.vmem [shape: bf16[192,128], index: 7, kind: input, shape index: {}]   ;;  %s1642_s8 = inlined_call_operand.vmem [shape: f32[1,128], index: 8, kind: input, shape index: {}]   ;;  %s1643_s9 = inlined_call_operand.hbm [shape: f32[8,128], index: 9, kind: output, shape index: {}]  }
   0x1   :  { %15 = vsyncpa [#allocation6], 0 }
   0x2   :  { %16 = vsyncpa [#allocation4], 0  ;;  %s1262_s30 = smov [#allocation5]   ;;  %s1263_s11 = smov [#allocation2]  }
   0x3   :  { %s35_s10 = sshll.u32 %s1262_s30, 4  ;;  %s23_s12 = sshll.u32 %s1263_s11, 4  ;;  %s36_s10 = int_to_ptr.vmem [resolvable:$true] %s35_s10  ;;  %s24_s12 = int_to_ptr.vmem [resolvable:$true] %s23_s12 }
   0x4   :  { %s1168_s15 = scalar_lea.hbm %s1636_s2, 128 }
   0x5   :  { %p1169_p0 = scmp.ne.s32.totalorder %s1636_s2, %s1168_s15  ;;  %p1172_p1 = scmp.lt.u32.totalorder %s1168_s15, %s1636_s2 }
   0x7   :  { %p1174_p2 = pnand %p1172_p1, %p1169_p0 }
   0x9   :  { %1177 = shalt.err (!%p1174_p2)
}
   0xa   :  { %s1178_s20 = scalar_lea.vmem %s36_s10, 128  ;;  %p1183_p4 = scmp.lt.s32.totalorder %s36_s10, %s36_s10 }
   0xb   :  { %p1179_p3 = scmp.ne.s32.totalorder %s36_s10, %s1178_s20  ;;  %p1184_p5 = scmp.lt.s32.totalorder %s1178_s20, %s1178_s20 }
   0xd   :  { %p1185_p6 = por %p1184_p5, %p1183_p4 }
   0xf   :  { %p1186_p7 = pnand %p1185_p6, %p1179_p3 }
  0x11   :  { %1189 = shalt.err (!%p1186_p7)
}
  0x12   :  { %38 = dma.hbm_to_vmem [thread:$0]  %s1636_s2, 128, %s36_s10, [#allocation6]  }
  0x13   :  { %s1190_s25 = scalar_lea.hbm %s1634_s0, 64 }
  0x14   :  { %p1191_p8 = scmp.ne.s32.totalorder %s1634_s0, %s1190_s25  ;;  %p1194_p9 = scmp.lt.u32.totalorder %s1190_s25, %s1634_s0 }
  0x16   :  { %p1196_p10 = pnand %p1194_p9, %p1191_p8 }
  0x18   :  { %1199 = shalt.err (!%p1196_p10)
}
  0x19   :  { %s1200_s30 = scalar_lea.vmem %s24_s12, 64  ;;  %p1205_p12 = scmp.lt.s32.totalorder %s24_s12, %s24_s12 }
  0x1a   :  { %p1201_p11 = scmp.ne.s32.totalorder %s24_s12, %s1200_s30  ;;  %p1206_p13 = scmp.lt.s32.totalorder %s1200_s30, %s1200_s30 }
  0x1c   :  { %p1207_p0 = por %p1206_p13, %p1205_p12 }
  0x1e   :  { %p1208_p1 = pnand %p1207_p0, %p1201_p11 }
  0x20   :  { %1211 = shalt.err (!%p1208_p1)
}
  0x21   :  { %26 = dma.hbm_to_vmem [thread:$0]  %s1634_s0, 64, %s24_s12, [#allocation3]  }
  0x22   :  { %s1264_s11 = smov [#allocation7]   ;;  %s1212_s16 = scalar_lea.hbm %s1637_s3, 2048 }
  0x23   :  { %s44_s13 = sshll.u32 %s1264_s11, 4  ;;  %p1213_p2 = scmp.ne.s32.totalorder %s1637_s3, %s1212_s16  ;;  %s45_s13 = int_to_ptr.vmem [resolvable:$true] %s44_s13 }
  0x24   :  { %p1216_p3 = scmp.lt.u32.totalorder %s1212_s16, %s1637_s3 }
  0x26   :  { %p1218_p4 = pnand %p1216_p3, %p1213_p2 }
  0x28   :  { %1221 = shalt.err (!%p1218_p4)
}
  0x29   :  { %s1222_s21 = scalar_lea.vmem %s45_s13, 2048  ;;  %p1227_p6 = scmp.lt.s32.totalorder %s45_s13, %s45_s13 }
  0x2a   :  { %p1223_p5 = scmp.ne.s32.totalorder %s45_s13, %s1222_s21  ;;  %p1228_p7 = scmp.lt.s32.totalorder %s1222_s21, %s1222_s21 }
  0x2c   :  { %p1229_p8 = por %p1228_p7, %p1227_p6 }
  0x2e   :  { %p1230_p9 = pnand %p1229_p8, %p1223_p5 }
  0x30   :  { %1233 = shalt.err (!%p1230_p9)
}
  0x31   :  { %s1265_s0 = smov 64   ;;  %s1266_s12 = smov 4  }
  0x32   :  { %50 = dma.hbm_to_vmem [thread:$0]  %s1637_s3, 2048, %s45_s13, [#allocation6], %s1265_s0, %s1265_s0, %s1266_s12  }
  0x33   :  { %1256 = dma.done.wait [#allocation3], 64  }
  0x34   :  { %1257 = vsyncadd [#allocation3], 4294967232 }
  0x35   :  { %1258 = dma.done.wait [#allocation6], 2176  }
  0x36   :  { %1259 = vsyncadd [#allocation6], 4294965120  ;;  %v1267_v0 = vmov 0   ;;  %v1078_v1 = vld [vmem:[%s1635_s1 + $0x4] ss:$8 sps:$4 sm:$0xff]   ;;  %v90_v18 = vlaneseq  ;;  %v1104_v36 = vld [vmem:[#allocation7 + $0x48] sm:$0xff]  }
  0x37   :  { %220 = vmatprep.mubr.bf16.mxu0 %v1267_v0  ;;  %v1080_v2 = vld [vmem:[%s1635_s1] ss:$8 sps:$4 sm:$0xff]   ;;  %188 = vmatprep.subr.bf16.mxu0 %v1078_v1  ;;  %v1081_v3 = vld [vmem:[%s1635_s1 + $0x14] ss:$8 sps:$4 sm:$0xff]   ;;  %v1083_v4 = vld [vmem:[%s1635_s1 + $0x10] ss:$8 sps:$4 sm:$0xff]  }
  0x38   :  { %189 = vmatpush1.bf16.msra.mxu0 %v1080_v2  ;;  %v1084_v5 = vld [vmem:[%s1635_s1 + $0x24] ss:$8 sps:$4 sm:$0xff]   ;;  %v1086_v6 = vld [vmem:[%s1635_s1 + $0x20] ss:$8 sps:$4 sm:$0xff]   ;;  %v1087_v7 = vld [vmem:[%s1635_s1 + $0x34] ss:$8 sps:$4 sm:$0xff]  }
  0x39   :  { %190 = vmatprep.subr.bf16.mxu0 %v1081_v3  ;;  %v1089_v8 = vld [vmem:[%s1635_s1 + $0x30] ss:$8 sps:$4 sm:$0xff]   ;;  %v1090_v9 = vld [vmem:[%s1635_s1 + $0x44] ss:$8 sps:$4 sm:$0xff]   ;;  %v1092_v10 = vld [vmem:[%s1635_s1 + $0x40] ss:$8 sps:$4 sm:$0xff]  }
  0x3a   :  { %v1093_v11 = vld [vmem:[%s1635_s1 + $0x54] ss:$8 sps:$4 sm:$0xff]   ;;  %v1095_v12 = vld [vmem:[%s1635_s1 + $0x50] ss:$8 sps:$4 sm:$0xff]   ;;  %v1096_v13 = vld [vmem:[%s1635_s1 + $0x64] ss:$8 sps:$4 sm:$0xff]  }
  0x3b   :  { %v1098_v14 = vld [vmem:[%s1635_s1 + $0x60] ss:$8 sps:$4 sm:$0xff]   ;;  %v1099_v15 = vld [vmem:[%s1635_s1 + $0x74] ss:$8 sps:$4 sm:$0xff]   ;;  %v1101_v16 = vld [vmem:[%s1635_s1 + $0x70] ss:$8 sps:$4 sm:$0xff]  }
  0x3c   :  { %191 = vmatpush1.bf16.msra.mxu0 %v1083_v4  ;;  %v72_v17 = vld [vmem:[#allocation2] sm:$0xf]  ;;  %v1407_v19 = vshrl.u32 %v90_v18, 7  ;;  %v1412_v21 = vld [vmem:[#allocation5] sm:$0x77]  ;;  %v1102_v34 = vld [vmem:[#allocation7 + $0x40] sm:$0xff]  }
  0x3d   :  { %192 = vmatprep.subr.bf16.mxu0 %v1084_v5  ;;  %v1103_v35 = vld [vmem:[#allocation7] sm:$0xff]   ;;  %1048 = vmatprep.subr.bf16.mxu1 %v1102_v34  ;;  %v1105_v37 = vld [vmem:[#allocation7 + $0x8] sm:$0xff]   ;;  %v1106_v45 = vld [vmem:[#allocation7 + $0x50] sm:$0xff]   ;;  %vm659_vm3 = vcmask 523264  }
  0x3e   :  { %v1410_v20 = vsub.s32 0, %v1407_v19  ;;  %v96_v22 = vsub.s32 4, %v1407_v19  ;;  %1049 = vmatpush3.bf16.msra.mxu1 %v1103_v35  ;;  %v1107_v46 = vld [vmem:[#allocation7 + $0x10] sm:$0xff]   ;;  %v1108_v47 = vld [vmem:[#allocation7 + $0x58] sm:$0xff]   ;;  %v1110_v49 = vld [vmem:[#allocation7 + $0x60] sm:$0xff]   ;;  %v1424_v60 = vsub.s32 1, %v1407_v19 }
  0x3f   :  { %1050 = vmatprep.subr.bf16.mxu1 %v1104_v36  ;;  %v1109_v48 = vld [vmem:[#allocation7 + $0x18] sm:$0xff]   ;;  %v1111_v50 = vld [vmem:[#allocation7 + $0x20] sm:$0xff]   ;;  %v1112_v51 = vld [vmem:[#allocation7 + $0x68] sm:$0xff]   ;;  %v252_v61 = vsub.s32 5, %v1407_v19  ;;  %v1428_v62 = vsub.s32 2, %v1407_v19  ;;  %v272_v63 = vsub.s32 6, %v1407_v19 }
  0x40   :  { %193 = vmatpush1.bf16.msra.mxu0 %v1086_v6  ;;  %v93_v23 = vrot.slane %v1412_v21, %v1410_v20  ;;  %v97_v24 = vrot.slane %v1412_v21, %v96_v22  ;;  %v1113_v52 = vld [vmem:[#allocation7 + $0x28] sm:$0xff]   ;;  %v1114_v53 = vld [vmem:[#allocation7 + $0x70] sm:$0xff]   ;;  %v1116_v55 = vld [vmem:[#allocation7 + $0x78] sm:$0xff]   ;;  %v249_v2 = vrot.slane %v1412_v21, %v1424_v60 }
  0x41   :  { %194 = vmatprep.subr.bf16.mxu0 %v1087_v7  ;;  %v1115_v54 = vld [vmem:[#allocation7 + $0x30] sm:$0xff]   ;;  %v1117_v56 = vld [vmem:[#allocation7 + $0x38] sm:$0xff]   ;;  %v253_v1 = vrot.slane %v1412_v21, %v252_v61  ;;  %v273_v3 = vrot.slane %v1412_v21, %v272_v63  ;;  %v269_v4 = vrot.slane %v1412_v21, %v1428_v62  ;;  %v1121_v35 = vld [vmem:[%s1639_s5 + $0x10] ss:$8 sps:$4 sm:$0xff]  }
  0x42   :  { %v103_v25 = vrot.slane %v93_v23, %v1410_v20  ;;  %v107_v26 = vrot.slane %v97_v24, %v1410_v20  ;;  %1051 = vmatpush3.bf16.msra.mxu1 %v1105_v37  ;;  %v259_v6 = vrot.slane %v249_v2, %v1424_v60  ;;  %v288_v21 = vld [vmem:[%s1638_s4] sm:$0x7]  ;;  %v1123_v34 = vld [vmem:[%s1639_s5 + $0x14] ss:$8 sps:$4 sm:$0xff]  }
  0x43   :  { %1052 = vmatprep.subr.bf16.mxu1 %v1106_v45  ;;  %v263_v5 = vrot.slane %v253_v1, %v1424_v60  ;;  %v1130_v45 = vld [vmem:[%s1639_s5 + $0x40] ss:$8 sps:$4 sm:$0xff]  }
  0x44   :  { %195 = vmatpush1.bf16.msra.mxu0 %v1089_v8 }
  0x45   :  { %196 = vmatprep.subr.bf16.mxu0 %v1090_v9  ;;  %v283_v9 = vrot.slane %v273_v3, %v1428_v62 }
  0x46   :  { %1053 = vmatpush3.bf16.msra.mxu1 %v1107_v46  ;;  %v1135_v46 = vld [vmem:[%s1639_s5 + $0x54] ss:$8 sps:$4 sm:$0xff]  }
  0x47   :  { %1054 = vmatprep.subr.bf16.mxu1 %v1108_v47  ;;  %v1133_v47 = vld [vmem:[%s1639_s5 + $0x50] ss:$8 sps:$4 sm:$0xff]  }
  0x48   :  { %197 = vmatpush1.bf16.msra.mxu0 %v1092_v10 }
  0x49   :  { %198 = vmatprep.subr.bf16.mxu0 %v1093_v11  ;;  %v279_v11 = vrot.slane %v269_v4, %v1428_v62  ;;  %v1502_v4 = vld [vmem:[%s1640_s6] sm:$0x77] }
  0x4a   :  { %1055 = vmatpush3.bf16.msra.mxu1 %v1109_v48  ;;  %v1138_v48 = vld [vmem:[%s1639_s5 + $0x64] ss:$8 sps:$4 sm:$0xff]  }
  0x4b   :  { %1056 = vmatprep.subr.bf16.mxu1 %v1110_v49  ;;  %v1136_v49 = vld [vmem:[%s1639_s5 + $0x60] ss:$8 sps:$4 sm:$0xff]  }
  0x4c   :  { %199 = vmatpush1.bf16.msra.mxu0 %v1095_v12 }
  0x4d   :  { %200 = vmatprep.subr.bf16.mxu0 %v1096_v13 }
  0x4e   :  { %1057 = vmatpush3.bf16.msra.mxu1 %v1111_v50  ;;  %v1141_v50 = vld [vmem:[%s1639_s5 + $0x74] ss:$8 sps:$4 sm:$0xff]  }
  0x4f   :  { %1058 = vmatprep.subr.bf16.mxu1 %v1112_v51  ;;  %v1139_v51 = vld [vmem:[%s1639_s5 + $0x70] ss:$8 sps:$4 sm:$0xff]  }
  0x50   :  { %201 = vmatpush1.bf16.msra.mxu0 %v1098_v14 }
  0x51   :  { %202 = vmatprep.subr.bf16.mxu0 %v1099_v15 }
  0x52   :  { %1059 = vmatpush3.bf16.msra.mxu1 %v1113_v52 }
  0x53   :  { %1060 = vmatprep.subr.bf16.mxu1 %v1114_v53 }
  0x54   :  { %203 = vmatpush1.bf16.msra.mxu0 %v1101_v16 }
  0x56   :  { %1061 = vmatpush3.bf16.msra.mxu1 %v1115_v54 }
  0x57   :  { %221 = vmatmul.mubr.bf16.vlgmr.msra.gmra.mrb[0].mxu0 %v72_v17  ;;  %1062 = vmatprep.subr.bf16.mxu1 %v1116_v55  ;;  %v478_v55 = vrot.slane %v288_v21, %v1424_v60 }
  0x58   :  { %635 = vmatprep.mubr.bf16.mxu0 %v1267_v0 }
  0x5a   :  { %1063 = vmatpush3.bf16.msra.mxu1 %v1117_v56 }
  0x5b   :  { %904 = vmatprep.subr.bf16.mxu1 %v1267_v0 }
 0x12a   :  { %v222_v27 = vpop.f32.mrb[0].mxu0 }
 0x12b   :  { %v223_v28 = vadd.f32 %v222_v27, %v103_v25  ;;  %v224_v29 = vpop.f32.mrb[1].mxu0 }
 0x12c   :  { %v225_v30 = vadd.f32 %v224_v29, %v107_v26  ;;  %v226_v31 = vpop.f32.mrb[2].mxu0  ;;  %v326_v26 = vrot.slane %v288_v21, %v1410_v20 }
 0x12d   :  { %v227_v32 = vpop.f32.mrb[3].mxu0 }
 0x12e   :  { %v229_v33 = vadd.f32 %v225_v30, %v223_v28  ;;  %v1118_v32 = vld [vmem:[%s1639_s5] ss:$8 sps:$4 sm:$0xff]  }
 0x130   :  { %230 = vadd.xlane.f32.xlu0 %v229_v33  ;;  %v1120_v33 = vld [vmem:[%s1639_s5 + $0x4] ss:$8 sps:$4 sm:$0xff]  }
 0x131   :  { %603 = vmatprep.subr.bf16.mxu0 %v1120_v33  ;;  %v1143_v33 = vld [vmem:[%s1641_s7 + $0x8] sm:$0xff]  }
 0x132   :  { %604 = vmatpush1.bf16.msra.mxu0 %v1118_v32  ;;  %v1142_v32 = vld [vmem:[%s1641_s7] sm:$0xff]  }
 0x133   :  { %605 = vmatprep.subr.bf16.mxu0 %v1123_v34  ;;  %v1144_v34 = vld [vmem:[%s1641_s7 + $0x10] sm:$0xff]  }
 0x136   :  { %606 = vmatpush1.bf16.msra.mxu0 %v1121_v35  ;;  %v1145_v35 = vld [vmem:[%s1641_s7 + $0x18] sm:$0xff]  }
 0x1bd   :  { %v231_v38 = vpop.xlane.xlu0 %230 }
 0x1be   :  { %v233_v39 = vmul.f32 0.00390625, %v231_v38 }
 0x1c0   :  { %v234_v40 = vsub.f32 %v223_v28, %v233_v39  ;;  %v235_v41 = vsub.f32 %v225_v30, %v233_v39 }
 0x1c2   :  { %v236_v42 = vmul.f32 %v234_v40, %v234_v40  ;;  %v237_v43 = vmul.f32 %v235_v41, %v235_v41 }
 0x1c4   :  { %v238_v44 = vadd.f32 %v237_v43, %v236_v42  ;;  %v1129_v42 = vld [vmem:[%s1639_s5 + $0x34] ss:$8 sps:$4 sm:$0xff]   ;;  %v1127_v43 = vld [vmem:[%s1639_s5 + $0x30] ss:$8 sps:$4 sm:$0xff]  }
 0x1c6   :  { %239 = vadd.xlane.f32.xlu0 %v238_v44  ;;  %v1132_v44 = vld [vmem:[%s1639_s5 + $0x44] ss:$8 sps:$4 sm:$0xff]  }
 0x253   :  { %v240_v57 = vpop.xlane.xlu0 %239 }
 0x254   :  { %v241_v58 = vmul.f32 0.00390625, %v240_v57  ;;  %v483_v57 = vrot.slane %v288_v21, %v1428_v62 }
 0x256   :  { %v242_v59 = vadd.f32 1e-05, %v241_v58 }
 0x258   :  { %1154 = vrsqrt.f32 %v242_v59 }
 0x262   :  { %v1155_v7 = vpop.eup %1154 }
 0x263   :  { %v245_v8 = vmul.f32 %v1155_v7, %v235_v41  ;;  %v244_v10 = vmul.f32 %v1155_v7, %v234_v40  ;;  %v1126_v40 = vld [vmem:[%s1639_s5 + $0x24] ss:$8 sps:$4 sm:$0xff]   ;;  %v1124_v41 = vld [vmem:[%s1639_s5 + $0x20] ss:$8 sps:$4 sm:$0xff]   ;;  %v512_v7 = vrot.slane %v1502_v4, %v96_v22 }
 0x264   :  { %607 = vmatprep.subr.bf16.mxu0 %v1126_v40 }
 0x265   :  { %v265_v12 = vmul.f32 %v263_v5, %v245_v8  ;;  %v264_v13 = vmul.f32 %v259_v6, %v244_v10  ;;  %608 = vmatpush1.bf16.msra.mxu0 %v1124_v41  ;;  %v1505_v5 = vand.u32 127, %v90_v18  ;;  %v508_v6 = vrot.slane %v1502_v4, %v1410_v20 }
 0x266   :  { %609 = vmatprep.subr.bf16.mxu0 %v1129_v42  ;;  %v522_v10 = vrot.slane %v512_v7, %v1410_v20 }
 0x267   :  { %v285_v14 = vadd.f32 %v283_v9, %v265_v12  ;;  %v284_v15 = vadd.f32 %v279_v11, %v264_v13  ;;  %v646_v8 = vadd.s32 128, %v1505_v5  ;;  %v518_v9 = vrot.slane %v508_v6, %v1410_v20 }
 0x268   :  { %vm669_vm1 = vcmp.ge.s32.totalorder %v1505_v5, 64  ;;  %vm649_vm2 = vcmp.lt.s32.totalorder %v1505_v5, 64  ;;  %v1268_v13 = vmov 0.0   ;;  %vm944_vm4 = vcmp.lt.s32.totalorder %v1505_v5, 6 }
 0x269   :  { %v287_v16 = vmax.f32 %v285_v14, 0.0  ;;  %v286_v17 = vmax.f32 %v284_v15, 0.0  ;;  %610 = vmatpush1.bf16.msra.mxu0 %v1127_v43  ;;  %vm693_vm0 = vcmp.lt.s32.totalorder %v646_v8, 192  ;;  %v1519_v22 = vsel %vm669_vm1, 1.0, %v1268_v13 }
 0x26a   :  { %611 = vmatprep.subr.bf16.mxu0 %v1132_v44  ;;  %v1517_v14 = vsel %vm693_vm0, 1.0, %v1268_v13  ;;  %vm961_vm5 = vcmp.lt.s32.totalorder %v1505_v5, 12 }
 0x26b   :  { %v290_v23 = vpack.c.bf16 %v287_v16, %v287_v16  ;;  %v289_v24 = vpack.c.bf16 %v286_v17, %v286_v17  ;;  %v1521_v17 = vsel %vm649_vm2, 1.0, %v1268_v13  ;;  %v1151_v13 = vld [vmem:[%s1641_s7 + $0x48] sm:$0xff]  }
 0x26d   :  { %455 = vmatprep.mubr.bf16.mxu1 %v290_v23  ;;  %612 = vmatpush1.bf16.msra.mxu0 %v1130_v45 }
 0x26e   :  { %456 = vmatmul.mubr.bf16.vlgmr.msra.gmra.mrb[0].mxu1 %v289_v24  ;;  %613 = vmatprep.subr.bf16.mxu0 %v1135_v46 }
 0x26f   :  { %905 = vmatpush1.bf16.msra.mxu1 %v1142_v32 }
 0x270   :  { %906 = vmatprep.subr.bf16.mxu1 %v1267_v0 }
 0x271   :  { %614 = vmatpush1.bf16.msra.mxu0 %v1133_v47 }
 0x272   :  { %615 = vmatprep.subr.bf16.mxu0 %v1138_v48 }
 0x273   :  { %907 = vmatpush1.bf16.msra.mxu1 %v1143_v33 }
 0x274   :  { %908 = vmatprep.subr.bf16.mxu1 %v1267_v0 }
 0x275   :  { %616 = vmatpush1.bf16.msra.mxu0 %v1136_v49 }
 0x276   :  { %617 = vmatprep.subr.bf16.mxu0 %v1141_v50 }
 0x277   :  { %909 = vmatpush1.bf16.msra.mxu1 %v1144_v34 }
 0x278   :  { %910 = vmatprep.subr.bf16.mxu1 %v1267_v0 }
 0x279   :  { %618 = vmatpush1.bf16.msra.mxu0 %v1139_v51 }
 0x27b   :  { %911 = vmatpush1.bf16.msra.mxu1 %v1145_v35 }
 0x27c   :  { %912 = vmatprep.subr.bf16.mxu1 %v1267_v0 }
 0x341   :  { %v1064_v25 = vpop.f32.mrb[0].mxu1 }
 0x342   :  { %v1065_v27 = vpop.f32.mrb[1].mxu1 }
 0x343   :  { %v1066_v28 = vadd.f32 %v1065_v27, %v1064_v25  ;;  %v1067_v29 = vpop.f32.mrb[2].mxu1 }
 0x344   :  { %v1068_v30 = vpop.f32.mrb[3].mxu1 }
 0x345   :  { %v458_v31 = vadd.f32 %v1066_v28, %v326_v26 }
 0x347   :  { %463 = vadd.xlane.f32.xlu1 %v458_v31 }
 0x3d4   :  { %v464_v36 = vpop.xlane.xlu1 %463 }
 0x3d5   :  { %v466_v37 = vmul.f32 0.0078125, %v464_v36 }
 0x3d7   :  { %v467_v38 = vsub.f32 %v458_v31, %v466_v37 }
 0x3d9   :  { %v468_v39 = vmul.f32 %v467_v38, %v467_v38 }
 0x3db   :  { %469 = vadd.xlane.f32.xlu1 %v468_v39 }
 0x468   :  { %v470_v52 = vpop.xlane.xlu1 %469 }
 0x469   :  { %v471_v53 = vmul.f32 0.0078125, %v470_v52 }
 0x46b   :  { %v472_v54 = vadd.f32 1e-05, %v471_v53 }
 0x46d   :  { %1156 = vrsqrt.f32 %v472_v54 }
 0x477   :  { %v1157_v56 = vpop.eup %1156 }
 0x478   :  { %v474_v58 = vmul.f32 %v1157_v56, %v467_v38 }
 0x47a   :  { %v479_v59 = vmul.f32 %v478_v55, %v474_v58 }
 0x47c   :  { %v484_v1 = vadd.f32 %v483_v57, %v479_v59 }
 0x47e   :  { %v485_v2 = vmax.f32 %v484_v1, 0.0 }
 0x480   :  { %v487_v3 = vpack.c.bf16 %v485_v2, %v485_v2 }
 0x482   :  { %636 = vmatmul.mubr.bf16.vlgmr.msra.gmra.mrb[4].mxu0 %v487_v3 }
 0x555   :  { %v637_v18 = vpop.f32.mrb[4].mxu0 }
 0x556   :  { %v638_v11 = vadd.f32 %v637_v18, %v518_v9  ;;  %v639_v12 = vpop.f32.mrb[5].mxu0  ;;  %v1146_v9 = vld [vmem:[%s1641_s7 + $0x20] sm:$0xff]   ;;  %v1148_v18 = vld [vmem:[%s1641_s7 + $0x30] sm:$0xff]  }
 0x557   :  { %v640_v15 = vadd.f32 %v639_v12, %v522_v10  ;;  %v641_v16 = vpop.f32.mrb[6].mxu0  ;;  %913 = vmatpush1.bf16.msra.mxu1 %v1146_v9  ;;  %v1147_v10 = vld [vmem:[%s1641_s7 + $0x28] sm:$0xff]   ;;  %v1150_v12 = vld [vmem:[%s1641_s7 + $0x40] sm:$0xff]  }
 0x558   :  { %v642_v23 = vpop.f32.mrb[7].mxu0  ;;  %v679_v21 = vmul.f32 %v1519_v22, %v638_v11  ;;  %v657_v25 = vmul.f32 %v1521_v17, %v638_v11  ;;  %v700_v30 = vmul.f32 0.0, %v638_v11  ;;  %914 = vmatprep.subr.bf16.mxu1 %v1267_v0  ;;  %v1153_v16 = vld [vmem:[%s1641_s7 + $0x58] sm:$0xff]  }
 0x559   :  { %v658_v20 = vmul.f32 0.0, %v640_v15  ;;  %v701_v24 = vmul.f32 %v1517_v14, %v640_v15 }
 0x55b   :  { %v660_v26 = vsel %vm659_vm3, %v658_v20, 0.0  ;;  %v702_v29 = vsel %vm659_vm3, %v701_v24, 0.0  ;;  %915 = vmatpush1.bf16.msra.mxu1 %v1147_v10 }
 0x55c   :  { %v682_v27 = vadd.f32 %v679_v21, %v660_v26  ;;  %v661_v28 = vadd.f32 %v660_v26, %v657_v25  ;;  %v703_v31 = vadd.f32 %v702_v29, %v700_v30  ;;  %916 = vmatprep.subr.bf16.mxu1 %v1267_v0 }
 0x55e   :  { %683 = vadd.xlane.f32.xlu1 %v682_v27  ;;  %662 = vadd.xlane.f32.xlu0 %v661_v28 }
 0x55f   :  { %917 = vmatpush1.bf16.msra.mxu1 %v1148_v18 }
 0x560   :  { %918 = vmatprep.subr.bf16.mxu1 %v1267_v0 }
 0x562   :  { %704 = vadd.xlane.f32.xlu0 %v703_v31 }
 0x5eb   :  { %v684_v36 = vpop.xlane.xlu1 %683  ;;  %v663_v37 = vpop.xlane.xlu0 %662 }
 0x5ec   :  { %v685_v38 = vmul.f32 0.015625, %v684_v36  ;;  %v664_v39 = vmul.f32 0.015625, %v663_v37 }
 0x5ee   :  { %v686_v40 = vmul.f32 %v1519_v22, %v685_v38  ;;  %v687_v41 = vmul.f32 0.0, %v685_v38  ;;  %v665_v42 = vmul.f32 %v1521_v17, %v664_v39  ;;  %v666_v43 = vmul.f32 0.0, %v664_v39 }
 0x5ef   :  { %v705_v44 = vpop.xlane.xlu0 %704  ;;  %v777_v38 = vrot.slane %v1502_v4, %v1428_v62 }
 0x5f0   :  { %v706_v45 = vmul.f32 0.015625, %v705_v44  ;;  %v688_v46 = vadd.f32 %v686_v40, %v665_v42  ;;  %v689_v47 = vadd.f32 %v687_v41, %v666_v43 }
 0x5f1   :  { %v787_v44 = vrot.slane %v777_v38, %v1428_v62 }
 0x5f2   :  { %v707_v48 = vmul.f32 0.0, %v706_v45  ;;  %v708_v49 = vmul.f32 %v1517_v14, %v706_v45 }
 0x5f4   :  { %v709_v50 = vadd.f32 %v707_v48, %v688_v46  ;;  %v710_v51 = vadd.f32 %v708_v49, %v689_v47 }
 0x5f6   :  { %v1547_v52 = vsub.f32 %v638_v11, %v709_v50  ;;  %v1549_v53 = vsub.f32 %v640_v15, %v710_v51  ;;  %v1149_v11 = vld [vmem:[%s1641_s7 + $0x38] sm:$0xff]   ;;  %v1152_v15 = vld [vmem:[%s1641_s7 + $0x50] sm:$0xff]  }
 0x5f7   :  { %919 = vmatpush1.bf16.msra.mxu1 %v1149_v11 }
 0x5f8   :  { %v713_v54 = vmul.f32 %v1547_v52, %v1547_v52  ;;  %v714_v55 = vmul.f32 %v1549_v53, %v1549_v53  ;;  %920 = vmatprep.subr.bf16.mxu1 %v1267_v0 }
 0x5fa   :  { %v716_v56 = vmul.f32 0.0, %v714_v55  ;;  %v726_v57 = vmul.f32 %v1519_v22, %v713_v54  ;;  %v715_v58 = vmul.f32 %v1521_v17, %v713_v54  ;;  %v738_v59 = vmul.f32 %v1517_v14, %v714_v55 }
 0x5fb   :  { %v737_v6 = vmul.f32 0.0, %v713_v54  ;;  %921 = vmatpush1.bf16.msra.mxu1 %v1150_v12 }
 0x5fc   :  { %v717_v1 = vsel %vm659_vm3, %v716_v56, 0.0  ;;  %v739_v7 = vsel %vm659_vm3, %v738_v59, 0.0  ;;  %922 = vmatprep.subr.bf16.mxu1 %v1267_v0 }
 0x5fd   :  { %v729_v2 = vadd.f32 %v726_v57, %v717_v1  ;;  %v718_v3 = vadd.f32 %v717_v1, %v715_v58  ;;  %v740_v8 = vadd.f32 %v739_v7, %v737_v6 }
 0x5ff   :  { %730 = vadd.xlane.f32.xlu0 %v729_v2  ;;  %719 = vadd.xlane.f32.xlu1 %v718_v3 }
 0x600   :  { %923 = vmatpush1.bf16.msra.mxu1 %v1151_v13 }
 0x601   :  { %924 = vmatprep.subr.bf16.mxu1 %v1267_v0 }
 0x603   :  { %741 = vadd.xlane.f32.xlu1 %v740_v8 }
 0x604   :  { %925 = vmatpush1.bf16.msra.mxu1 %v1152_v15 }
 0x605   :  { %926 = vmatprep.subr.bf16.mxu1 %v1267_v0 }
 0x608   :  { %927 = vmatpush1.bf16.msra.mxu1 %v1153_v16 }
 0x68c   :  { %v731_v23 = vpop.xlane.xlu0 %730  ;;  %v720_v20 = vpop.xlane.xlu1 %719 }
 0x68d   :  { %v732_v24 = vmul.f32 0.015625, %v731_v23  ;;  %v721_v21 = vmul.f32 0.015625, %v720_v20 }
 0x68f   :  { %v733_v25 = vmul.f32 %v1519_v22, %v732_v24  ;;  %v734_v26 = vmul.f32 0.0, %v732_v24  ;;  %v722_v27 = vmul.f32 %v1521_v17, %v721_v21  ;;  %v723_v28 = vmul.f32 0.0, %v721_v21 }
 0x690   :  { %v742_v29 = vpop.xlane.xlu1 %741  ;;  %v757_v22 = vrot.slane %v1502_v4, %v1424_v60  ;;  %v761_v17 = vrot.slane %v1502_v4, %v252_v61 }
 0x691   :  { %v743_v30 = vmul.f32 0.015625, %v742_v29  ;;  %v735_v31 = vadd.f32 %v733_v25, %v722_v27  ;;  %v736_v32 = vadd.f32 %v734_v26, %v723_v28 }
 0x692   :  { %v767_v39 = vrot.slane %v757_v22, %v1424_v60  ;;  %v771_v41 = vrot.slane %v761_v17, %v1424_v60  ;;  %v1034_v60 = vld [vmem:[%s1642_s8] ss:$0 sm:$0xff]  ;;  %s1269_s8 = smov [#allocation8]  }
 0x693   :  { %v744_v33 = vmul.f32 0.0, %v743_v30  ;;  %v745_v34 = vmul.f32 %v1517_v14, %v743_v30  ;;  %v781_v14 = vrot.slane %v1502_v4, %v272_v63  ;;  %s973_s16 = sshll.u32 %s1269_s8, 4  ;;  %s974_s16 = int_to_ptr.vmem [resolvable:$true] %s973_s16 }
 0x694   :  { %s1234_s4 = scalar_lea.vmem %s974_s16, 128  ;;  %p1239_p11 = scmp.lt.s32.totalorder %s974_s16, %s974_s16 }
 0x695   :  { %v746_v35 = vadd.f32 %v744_v33, %v735_v31  ;;  %v747_v0 = vadd.f32 %v745_v34, %v736_v32  ;;  %v791_v61 = vrot.slane %v781_v14, %v1428_v62  ;;  %p1235_p10 = scmp.ne.s32.totalorder %s974_s16, %s1234_s4  ;;  %p1240_p12 = scmp.lt.s32.totalorder %s1234_s4, %s1234_s4 }
 0x697   :  { %v748_v36 = vadd.f32 1e-05, %v746_v35  ;;  %v749_v37 = vadd.f32 1e-05, %v747_v0  ;;  %p1241_p13 = por %p1240_p12, %p1239_p11 }
 0x699   :  { %1158 = vrsqrt.f32 %v748_v36  ;;  %p1242_p0 = pnand %p1241_p13, %p1235_p10 }
 0x69a   :  { %1160 = vrsqrt.f32 %v749_v37 }
 0x6a3   :  { %v1159_v40 = vpop.eup %1158 }
 0x6a4   :  { %v1161_v42 = vpop.eup %1160  ;;  %v752_v43 = vmul.f32 %v1159_v40, %v1547_v52 }
 0x6a5   :  { %v753_v45 = vmul.f32 %v1161_v42, %v1549_v53 }
 0x6a6   :  { %v772_v46 = vmul.f32 %v767_v39, %v752_v43 }
 0x6a7   :  { %v773_v47 = vmul.f32 %v771_v41, %v753_v45 }
 0x6a8   :  { %v792_v48 = vadd.f32 %v787_v44, %v772_v46 }
 0x6a9   :  { %v793_v19 = vadd.f32 %v791_v61, %v773_v47 }
 0x6aa   :  { %v794_v49 = vmax.f32 %v792_v48, 0.0 }
 0x6ab   :  { %v795_v63 = vmax.f32 %v793_v19, 0.0 }
 0x6ac   :  { %v796_v4 = vpack.c.bf16 %v794_v49, %v794_v49 }
 0x6ad   :  { %v797_v50 = vpack.c.bf16 %v795_v63, %v795_v63 }
 0x6af   :  { %1047 = vmatprep.mubr.msk.bf16.mxu1 %vm659_vm3, %v797_v50 }
 0x6b0   :  { %937 = vmatmul.mubr.bf16.vlgmr.msra.gmra.mrb[4].mxu1 %v796_v4 }
 0x783   :  { %v938_v51 = vpop.f32.mrb[4].mxu1 }
 0x784   :  { %v939_v52 = vadd.f32 %v1034_v60, %v938_v51  ;;  %v940_v62 = vpop.f32.mrb[5].mxu1 }
 0x785   :  { %v941_v53 = vpop.f32.mrb[6].mxu1 }
 0x786   :  { %v942_v54 = vpop.f32.mrb[7].mxu1  ;;  %v947_v55 = vsel %vm944_vm4, %v939_v52, -inf }
 0x787   :  { %948 = vmax.xlane.f32.xlu0 %v947_v55 }
 0x814   :  { %v949_v56 = vpop.xlane.xlu0 %948 }
 0x815   :  { %v950_v57 = vsub.f32 %v939_v52, %v949_v56 }
 0x817   :  { %v951_v58 = vmul.f32 1.442695, %v950_v57 }
 0x819   :  { %1162 = vpow2.f32 %v951_v58 }
 0x823   :  { %v1163_v59 = vpop.eup %1162 }
 0x824   :  { %v953_v1 = vsel %vm944_vm4, %v1163_v59, 0.0 }
 0x825   :  { %954 = vadd.xlane.f32.xlu1 %v953_v1 }
 0x8b2   :  { %v955_v2 = vpop.xlane.xlu1 %954 }
 0x8b3   :  { %1164 = vlog2.f32 %v955_v2 }
 0x8bd   :  { %v1165_v3 = vpop.eup %1164 }
 0x8be   :  { %v957_v6 = vmul.f32 0.6931472, %v1165_v3 }
 0x8c0   :  { %v958_v7 = vsub.f32 %v950_v57, %v957_v6 }
 0x8c2   :  { %v959_v8 = vmul.f32 1.442695, %v958_v7  ;;  %v964_v10 = vsel %vm961_vm5, %v958_v7, %v939_v52 }
 0x8c4   :  { %1166 = vpow2.f32 %v959_v8 }
 0x8ce   :  { %v1167_v9 = vpop.eup %1166 }
 0x8cf   :  { %v965_v18 = vsel %vm944_vm4, %v1167_v9, %v964_v10 }
 0x8d0   :  { %966 = vst [vmem:[#allocation8] sm:$0xff] %v965_v18 }
 0x8d1   :  { %1245 = shalt.err (!%p1242_p0)
}
 0x8d2   :  { %s1246_s6 = scalar_lea.hbm %s1643_s9, 128 }
 0x8d3   :  { %p1247_p1 = scmp.ne.s32.totalorder %s1643_s9, %s1246_s6  ;;  %p1250_p2 = scmp.lt.u32.totalorder %s1246_s6, %s1643_s9 }
 0x8d5   :  { %p1252_p3 = pnand %p1250_p2, %p1247_p1 }
 0x8d7   :  { %1255 = shalt.err (!%p1252_p3)
}
 0x8d8   :  { %976 = dma.vmem_to_hbm [thread:$0]  %s974_s16, 128, %s1643_s9, [#allocation4]  }
 0x8d9   :  { %1260 = dma.done.wait [#allocation4], 128  }
 0x8da   :  { %1261 = vsyncadd [#allocation4], 4294967168 }
 0x8db   :  { %980 = vsyncpa [#allocation3], 1 }
 0x8dc   :  { %981 = vsyncpa [#allocation6], 1 }
 0x8dd   :  { %982 = vsyncpa [#allocation4], 1 }

</bundles_post_ra>
